<compile_context>
chip_gen: v7x
topology: tpu7x:2x2x1
jax: 0.10.0
libtpu: 0.0.40
codegen_flags: <defaults>
</compile_context>

<pallas_src>
import jax
import jax.numpy as jnp
from jax.experimental import pallas as pl
from jax.experimental.pallas import tpu as pltpu

LANE = 128
SUBLANE = 8


def _round_up(x, m):
    return (x + m - 1) // m * m


def actor_ddpg_kernel(x_ref, w_ref, b_ref, o_ref):
    # Single affine map (the 3 activation-free Linear layers folded at pack
    # time): bf16 operands, f32 MXU accumulation, f32 bias, f32 store.
    acc = jnp.dot(x_ref[...], w_ref[...], preferred_element_type=jnp.float32)
    o_ref[...] = (acc + b_ref[...]).astype(o_ref.dtype)


def init_torch_params(key, obs_dim, h1, h2, act_dim, init_1, init_2, init_3):
    """Deterministic synthetic init mirroring the module's __init__:
    weights ~ U(-init_i, init_i) in PyTorch (out, in) layout, biases = 0.01."""
    k1, k2, k3 = jax.random.split(key, 3)
    # TODO(synk): self.log_std (Box action spaces) is a parameter only; it is
    # unused in forward(), so it is not materialized here.
    return {
        "w1": jax.random.uniform(k1, (h1, obs_dim), jnp.float32, -init_1, init_1),
        "b1": jnp.full((h1,), 0.01, jnp.float32),
        "w2": jax.random.uniform(k2, (h2, h1), jnp.float32, -init_2, init_2),
        "b2": jnp.full((h2,), 0.01, jnp.float32),
        "w3": jax.random.uniform(k3, (act_dim, h2), jnp.float32, -init_3, init_3),
        "b3": jnp.full((act_dim,), 0.01, jnp.float32),
    }


def pack_params(torch_params, compute_dtype=jnp.bfloat16):
    """One-time packing (call at init, NOT per forward).

    forward() has no nonlinearity between the three Linear layers, so the whole
    stack is folded into one affine map (f32 fold; only ~1e-6-level summation-
    order differences vs. the layer-by-layer reference):
        W_eff = W1^T @ W2^T @ W3^T                  -> (obs_dim, act_dim)
        b_eff = ((b1 @ W2^T) + b2) @ W3^T + b3      -> (1, act_dim)
    The output dim is deliberately NOT padded to 128 so HBM writeback stays at
    act_dim*4 bytes/row instead of 128*4.
    # TODO(synk): revert to per-layer matmuls if activations are ever inserted
    # between the linear layers.
    """
    w1, b1 = torch_params["w1"], torch_params["b1"]
    w2, b2 = torch_params["w2"], torch_params["b2"]
    w3, b3 = torch_params["w3"], torch_params["b3"]
    w_eff = (w1.T @ w2.T @ w3.T).astype(compute_dtype)          # (obs_dim, act_dim)
    b_eff = ((b1 @ w2.T + b2) @ w3.T + b3)[None, :].astype(jnp.float32)
    return {"w_eff": w_eff, "b_eff": b_eff}


def _pick_tb(batch, cap):
    """Batch tile for overhead/DMA amortization, never requiring batch padding."""
    if batch <= cap:
        # For larger single-tile batches, split in two sublane-aligned halves so
        # v7x's second TensorCore gets work via the "parallel" grid axis.
        if batch >= 1024 and batch % (2 * SUBLANE) == 0:
            return batch // 2
        return batch  # block dim == full array dim is always a legal layout
    # Largest sublane-multiple tile <= cap that divides the batch exactly.
    start = min(cap, batch) // SUBLANE * SUBLANE
    for tb in range(start, 0, -SUBLANE):
        if batch % tb == 0:
            return tb
    return 0  # no clean divisor -> caller falls back to padding


def actor_ddpg_forward(state, packed, *, tb=None):
    """state: (B, obs_dim). packed: output of pack_params(). Returns (B, act_dim) f32."""
    w_eff, b_eff = packed["w_eff"], packed["b_eff"]
    obs_dim, act_dim = w_eff.shape
    B = state.shape[0]
    assert state.shape[1] == obs_dim

    if state.dtype != w_eff.dtype:
        # Fallback cast; to fully realize the halved HBM read the producer
        # should emit `state` directly in the compute dtype (bf16).
        state = state.astype(w_eff.dtype)

    if tb is None:
        tb = _pick_tb(B, cap=2048)

    if tb <= 0 or B % tb != 0:
        # TODO(synk): handle the ragged tail with a smaller final block instead
        # of padding (padding costs an extra HBM read+write of the input).
        if tb <= 0:
            tb = min(_round_up(B, SUBLANE), 2048)
        bp = _round_up(B, tb)
        state = jnp.pad(state, ((0, bp - B), (0, 0)))
    else:
        bp = B

    out = pl.pallas_call(
        actor_ddpg_kernel,
        out_shape=jax.ShapeDtypeStruct((bp, act_dim), jnp.float32),
        grid=(bp // tb,),
        in_specs=[
            pl.BlockSpec((tb, obs_dim), lambda i: (i, 0)),        # streamed batch tile
            pl.BlockSpec((obs_dim, act_dim), lambda i: (0, 0)),   # VMEM-resident weight
            pl.BlockSpec((1, act_dim), lambda i: (0, 0)),         # VMEM-resident bias
        ],
        out_specs=pl.BlockSpec((tb, act_dim), lambda i: (i, 0)),
        compiler_params=pltpu.CompilerParams(
            dimension_semantics=("parallel",),   # lets v7x shard the batch grid on 2 TCs
            vmem_limit_bytes=32 << 20,           # explicit; ample for tb<=8192, safe on v7x 64 MiB
        ),
    )(state, w_eff, b_eff)

    return out[:B] if bp != B else out


if __name__ == "__main__":
    key = jax.random.PRNGKey(0)
    kp, kx = jax.random.split(key)

    batch = 64          # small demo batch; scale up in real rollouts
    obs_dim = 8         # observation_space.shape[0]
    hidden_1 = 32
    hidden_2 = 32
    action_dim = 4      # action_space dimension
    init_1, init_2, init_3 = 0.1, 0.1, 3e-3

    torch_params = init_torch_params(kp, obs_dim, hidden_1, hidden_2, action_dim,
                                     init_1, init_2, init_3)
    packed = pack_params(torch_params)
    state = jax.random.normal(kx, (batch, obs_dim), jnp.float32)

    # Pure-JAX f32 reference (same math as the PyTorch forward, original layout).
    ref = state @ torch_params["w1"].T + torch_params["b1"]
    ref = ref @ torch_params["w2"].T + torch_params["b2"]
    ref = ref @ torch_params["w3"].T + torch_params["b3"]

    # tb=32 exercises a 2-step batch grid with resident weights at demo scale.
    out = actor_ddpg_forward(state, packed, tb=32)
    out = jax.block_until_ready(out)
    assert out.shape == (batch, action_dim)
    # bf16 operands / f32 accumulation vs. f32 reference -> loose tolerance.
    assert jnp.allclose(out, ref, atol=1e-3, rtol=1e-2)

    # Default tile selection path (single full-batch tile, no padding).
    out2 = jax.block_until_ready(actor_ddpg_forward(state, packed))
    assert jnp.allclose(out2, ref, atol=1e-3, rtol=1e-2)

    print("KERNEL_OK")
</pallas_src>

<mosaic_0001>
module attributes {stable_mosaic.version = 11 : i64} {
  func.func @actor_ddpg_kernel(%arg0: i32, %arg1: memref<32x8xbf16, #tpu.memory_space<vmem>>, %arg2: memref<8x4xbf16, #tpu.memory_space<vmem>>, %arg3: memref<1x4xf32, #tpu.memory_space<vmem>>, %arg4: memref<32x4xf32, #tpu.memory_space<vmem>>) attributes {dimension_semantics = [#tpu.dimension_semantics<parallel>], iteration_bounds = array<i64: 2>, scalar_prefetch = 0 : i64, scratch_operands = 0 : i64, tpu.core_type = #tpu.core_type<tc>, window_params = [{transform_indices = @transform_0, window_bounds = array<i64: 32, 8>}, {pipeline_mode = #tpu.pipeline_mode<synchronous>, transform_indices = @transform_1, window_bounds = array<i64: 8, 4>}, {pipeline_mode = #tpu.pipeline_mode<synchronous>, transform_indices = @transform_2, window_bounds = array<i64: 1, 4>}, {transform_indices = @transform_3, window_bounds = array<i64: 32, 4>}]} {
    %c0 = arith.constant 0 : index
    %c0_0 = arith.constant 0 : index
    %0 = vector.load %arg1[%c0, %c0_0] : memref<32x8xbf16, #tpu.memory_space<vmem>>, vector<32x8xbf16>
    %c0_1 = arith.constant 0 : index
    %c0_2 = arith.constant 0 : index
    %1 = vector.load %arg2[%c0_1, %c0_2] : memref<8x4xbf16, #tpu.memory_space<vmem>>, vector<8x4xbf16>
    %cst = arith.constant dense<0.000000e+00> : vector<32x4xf32>
    %2 = tpu.matmul %0, %1, %cst {dimension_numbers = #tpu.dot_dimension_numbers<[1], [0], [0], [1], [0, 0, 1, 1], [], []>} : vector<32x8xbf16>, vector<8x4xbf16>, vector<32x4xf32> -> vector<32x4xf32>
    %c0_3 = arith.constant 0 : index
    %c0_4 = arith.constant 0 : index
    %3 = vector.load %arg3[%c0_3, %c0_4] : memref<1x4xf32, #tpu.memory_space<vmem>>, vector<1x4xf32>
    %4 = vector.broadcast %3 : vector<1x4xf32> to vector<32x4xf32>
    %5 = arith.addf %2, %4 : vector<32x4xf32>
    %c0_5 = arith.constant 0 : index
    %c0_6 = arith.constant 0 : index
    %6 = vector.load %arg4[%c0_5, %c0_6] : memref<32x4xf32, #tpu.memory_space<vmem>>, vector<32x4xf32>
    tpu.vector_store %arg4[%c0_5, %c0_6], %5 {strides = array<i32>} : memref<32x4xf32, #tpu.memory_space<vmem>>, vector<32x4xf32>,
    return
  }
  func.func @transform_0(%arg0: i32) -> (i32, i32) {
    %c0_i32 = arith.constant 0 : i32
    %c0_i32_0 = arith.constant 0 : i32
    return %arg0, %c0_i32 : i32, i32
  }
  func.func @transform_1(%arg0: i32) -> (i32, i32) {
    %c0_i32 = arith.constant 0 : i32
    %c0_i32_0 = arith.constant 0 : i32
    %c0_i32_1 = arith.constant 0 : i32
    return %c0_i32, %c0_i32_0 : i32, i32
  }
  func.func @transform_2(%arg0: i32) -> (i32, i32) {
    %c0_i32 = arith.constant 0 : i32
    %c0_i32_0 = arith.constant 0 : i32
    %c0_i32_1 = arith.constant 0 : i32
    return %c0_i32, %c0_i32_0 : i32, i32
  }
  func.func @transform_3(%arg0: i32) -> (i32, i32) {
    %c0_i32 = arith.constant 0 : i32
    %c0_i32_0 = arith.constant 0 : i32
    return %arg0, %c0_i32 : i32, i32
  }
}

</mosaic_0001>

<bundles_post_ra>
// kernel: tpu_custom_call.1
= control target key start
LH: loop header
LB: loop body
LE: loop exit
PB: predicated region body
PF: predicated region fallthrough
CT: control target
= control target key end

     0   :  { %s382_s12 = smov 0   ;;  %s405_s0 = inlined_call_operand.vmem [shape: bf16[64,8], index: 0, kind: input, shape index: {}]   ;;  %s406_s1 = inlined_call_operand.vmem [shape: bf16[8,4], index: 1, kind: input, shape index: {}]   ;;  %s407_s2 = inlined_call_operand.vmem [shape: f32[1,4], index: 2, kind: input, shape index: {}]   ;;  %s408_s3 = inlined_call_operand.vmem [shape: f32[64,4], index: 3, kind: output, shape index: {}]  }
   0x1 LB: > { %s318_s13 = sadd.s32 4294967295, %s360_s12   ;;  %p322_p0 = scmp.ge.s32.totalorder %s360_s12, 1  ;;  %s360_s12 = sphi %s382_s12, %s13_s12  }
   0x2   : > { %p138_p1 = scmp.lt.s32.totalorder %s360_s12, 3 }
   0x4   : > { %p139_p2 = pnand %p322_p0, %p138_p1 }
   0x5   : > { %v179_v0 = vld [vmem:[%s406_s1] sm:$0xf] (!%p139_p2)  ;;  %vm204_vm0 = vcmask (!%p139_p2), 1043456   ;;  %s323_s16 = sshll.u32 (!%p139_p2), %s318_s13, 2  ;;  %vm197_vm1 = vcmask (!%p139_p2), 64512   ;;  %vm257_vm2 = vcmask (!%p139_p2), 31744  }
   0x6   : > { %142 = sbr.rel (%p139_p2) target bundleno = 236 (0xec), region = 32  ;;  %343 = vmatprep.subr.msk.bf16.mxu0 (!%p139_p2), %vm204_vm0, %v179_v0  ;;  %v206_v1 = vsel (!%p139_p2), %vm204_vm0, %v179_v0, 0  ;;  %p163_p3 = scmp.lt.s32.totalorder (!%p139_p2), %s323_s16, 7  ;;  %v327_v4 = vld [vmem:[%s407_s2] ss:$0 sm:$0xff] (!%p139_p2) }
   0x7   : > { %338 = vmatpush3.bf16.msra.mxu0 (!%p139_p2), %v206_v1 }
   0xd   : > { %s410_s16 = smov (!%p163_p3, %s323_s16), 7 }
   0xe   : > { %s324_s17 = sshll.u32 %s410_s16, 2  ;;  %s326_s21 = sshll.u32 %s410_s16, 3 }
   0xf   : > { %s166_s20 = scalar_lea.vmem %s405_s0, %s324_s17  ;;  %s172_s26 = scalar_lea.vmem %s408_s3, %s326_s21 }
  0x10   : > { %v352_v2 = vld [vmem:[%s166_s20] sm:$0xff]   ;;  %v353_v3 = vld [vmem:[%s166_s20 + $0x8] sm:$0xff]  }
  0x11   : > { %339 = vmatprep.mubr.msk.bf16.mxu0 %vm197_vm1, %v352_v2 }
  0x12   : > { %340 = vmatmul.mubr.msk.bf16.vlgmr.msra.gmra.mrb[0].mxu0 %vm197_vm1, %v353_v3 }
  0xe5   : > { %v341_v5 = vpop.f32.mrb[0].mxu0 }
  0xe6   : > { %v242_v6 = vpop.f32.mrb[1].mxu0  ;;  %v251_v11 = vadd.f32 %v341_v5, %v327_v4 }
  0xe7   : > { %v243_v7 = vadd.f32 %v327_v4, %v242_v6  ;;  %v342_v8 = vpop.f32.mrb[2].mxu0 }
  0xe8   : > { %v245_v9 = vpop.f32.mrb[3].mxu0  ;;  %v254_v12 = vadd.f32 %v342_v8, %v327_v4  ;;  %260 = vst.msk [vmem:[%s172_s26 + $0x10] sm:$0xff] %vm257_vm2, %v251_v11 }
  0xe9   : > { %258 = vst.msk [vmem:[%s172_s26] sm:$0xff] %vm257_vm2, %v243_v7  ;;  %v246_v10 = vadd.f32 %v327_v4, %v245_v9 }
  0xea   : > { %261 = vst.msk [vmem:[%s172_s26 + $0x18] sm:$0xff] %vm257_vm2, %v254_v12 }
  0xeb   : > { %259 = vst.msk [vmem:[%s172_s26 + $0x8] sm:$0xff] %vm257_vm2, %v246_v10 }
  0xec PF: > { %s13_s12 = sadd.s32 1, %s360_s12  }
  0xed   : > { %p10_p4 = scmp.ge.s32.totalorder %s13_s12, 4  }
  0xef   :  { %12 = sbr.rel (!%p10_p4) target bundleno = 1 (0x1), region = 62 }

</bundles_post_ra>
